<compile_context>
chip_gen: v6e
topology: v6e:2x2x1
jax: 0.10.0
libtpu: 0.0.40
codegen_flags: <defaults>
</compile_context>

<pallas_src>
import functools

import jax
import jax.numpy as jnp
from jax.experimental import pallas as pl
from jax.experimental.pallas import tpu as pltpu

LANE = 128


def _round_up(n, m):
    return ((n + m - 1) // m) * m


def _policy_kernel(x_ref, w1_ref, b1_ref, w2_ref, b2_ref, wc_ref, bc_ref, out_ref):
    x = x_ref[...]
    # body MLP: 2 x (Linear + tanh)   (MXU matmuls, EUP tanh)
    h1 = jnp.tanh(
        jnp.dot(x, w1_ref[...], preferred_element_type=jnp.float32) + b1_ref[...])
    h2 = jnp.tanh(
        jnp.dot(h1, w2_ref[...], preferred_element_type=jnp.float32) + b2_ref[...])
    # Combined head: out[:, :hidden] = body_x (identity columns),
    #                out[:, hidden:hidden+a] = mean (wm columns + bm).
    # Single lane-dense 128-wide matmul + unmasked 128-wide store.
    out_ref[...] = (
        jnp.dot(h2, wc_ref[...], preferred_element_type=jnp.float32) + bc_ref[...]
    ).astype(out_ref.dtype)


@functools.partial(jax.jit, static_argnames=("action_dim", "hidden", "batch_tile"))
def diag_gaussian_policy_forward(x, padded_params, log_std, *,
                                 action_dim, hidden, batch_tile=512):
    """Returns (mean, std, body_x); (mean, std) fully parameterize
    Independent(Normal(mean, std), 1).  std is the (action_dim,) vector
    (x-independent) — broadcast it downstream only if actually needed."""
    w1, b1, w2, b2, wc, bc = padded_params
    batch, obs_dim = x.shape
    out_cols = wc.shape[1]

    # Batch tiling. tb = min(batch_tile, round_up(batch, 8)) means the
    # small-batch inference path (batch <= batch_tile) never pads x; for large
    # training batches pick a batch_tile that divides the production batch to
    # avoid the pad copy entirely.
    tb = min(batch_tile, _round_up(batch, 8))
    b_padded = _round_up(batch, tb)
    if b_padded != batch:
        x = jnp.pad(x, ((0, b_padded - batch), (0, 0)))

    row_spec = lambda shape: pl.BlockSpec(shape, lambda i: (i, 0))
    resident = lambda shape: pl.BlockSpec(shape, lambda i: (0, 0))

    packed = pl.pallas_call(
        _policy_kernel,
        out_shape=jax.ShapeDtypeStruct((b_padded, out_cols), jnp.float32),
        grid=(b_padded // tb,),
        in_specs=[
            row_spec((tb, obs_dim)),          # x: full obs_dim width, no padding
            resident(w1.shape), resident(b1.shape),
            resident(w2.shape), resident(b2.shape),
            resident(wc.shape), resident(bc.shape),
        ],
        out_specs=row_spec((tb, out_cols)),
        compiler_params=pltpu.CompilerParams(
            dimension_semantics=("parallel",)),
    )(x, w1, b1, w2, b2, wc, bc)

    # One packed slab -> views for the caller.  (If downstream ops consume the
    # packed slab directly, return it instead and skip these slices.)
    body_x = packed[:batch, :hidden]
    mean = packed[:batch, hidden:hidden + action_dim]
    # std does not depend on x: one exp on (action_dim,), no broadcast write.
    std = jnp.exp(log_std)
    return mean, std, body_x


def init_params(key, obs_dim, hidden, action_dim, init_log_std=-0.51):
    """Unpadded parameters (weights stored [in, out])."""
    ks = jax.random.split(key, 6)
    s = 0.1
    w1 = s * jax.random.normal(ks[0], (obs_dim, hidden), jnp.float32)
    b1 = s * jax.random.normal(ks[1], (hidden,), jnp.float32)
    w2 = s * jax.random.normal(ks[2], (hidden, hidden), jnp.float32)
    b2 = s * jax.random.normal(ks[3], (hidden,), jnp.float32)
    wm = s * jax.random.normal(ks[4], (hidden, action_dim), jnp.float32)
    bm = s * jax.random.normal(ks[5], (action_dim,), jnp.float32)
    log_std = jnp.full((action_dim,), init_log_std, jnp.float32)
    return (w1, b1, w2, b2, wm, bm, log_std)


def pad_params(params):
    """Zero-pad hidden dims to a multiple of 128 and build the combined head
    Wc = [ I | wm ] (+ bc = [0 | bm]) so the kernel emits body_x and mean in a
    single lane-dense output.  Exact: padded columns stay identically zero.
    Done once, outside the per-step forward call."""
    w1, b1, w2, b2, wm, bm, _ = params
    hidden = w2.shape[1]
    action_dim = wm.shape[1]
    h_pad = _round_up(hidden, LANE)
    out_cols = _round_up(hidden + action_dim, LANE)

    def pad2(w, rows, cols):
        return jnp.pad(w, ((0, rows - w.shape[0]), (0, cols - w.shape[1])))

    def pad_row(b, cols):
        return jnp.pad(b, (0, cols - b.shape[0])).reshape(1, cols)

    # Combined head matrix: identity pass-through for body_x, wm for mean.
    wc = jnp.zeros((h_pad, out_cols), jnp.float32)
    wc = wc.at[:hidden, :hidden].set(jnp.eye(hidden, dtype=jnp.float32))
    wc = wc.at[:hidden, hidden:hidden + action_dim].set(wm)
    bc = jnp.zeros((1, out_cols), jnp.float32)
    bc = bc.at[0, hidden:hidden + action_dim].set(bm)

    return (pad2(w1, w1.shape[0], h_pad), pad_row(b1, h_pad),
            pad2(w2, h_pad, h_pad), pad_row(b2, h_pad),
            wc, bc)


if __name__ == "__main__":
    key = jax.random.PRNGKey(0)
    k_x, k_p = jax.random.split(key)

    batch, obs_dim, hidden, action_dim = 8, 32, 32, 8
    x = jax.random.normal(k_x, (batch, obs_dim), jnp.float32)
    params = init_params(k_p, obs_dim, hidden, action_dim)
    log_std = params[-1]
    padded = pad_params(params)

    # TODO(synk): Independent(Normal)/TransformedDistribution objects are not
    # representable in a kernel; (mean, std) fully parameterize the dist.
    mean, std, body_x = diag_gaussian_policy_forward(
        x, padded, log_std, action_dim=action_dim, hidden=hidden)
    jax.block_until_ready((mean, std, body_x))

    # plain-JAX reference on the unpadded weights
    w1, b1, w2, b2, wm, bm, _ = params
    h2_ref = jnp.tanh(jnp.tanh(x @ w1 + b1) @ w2 + b2)
    mean_ref = h2_ref @ wm + bm
    std_ref = jnp.exp(log_std)
    assert body_x.shape == (batch, hidden)
    assert mean.shape == (batch, action_dim)
    assert std.shape == (action_dim,)
    assert jnp.allclose(body_x, h2_ref, atol=1e-5)
    assert jnp.allclose(mean, mean_ref, atol=1e-5)
    assert jnp.allclose(std, std_ref, atol=1e-5)

    print("KERNEL_OK")
</pallas_src>

<mosaic_0001>
module attributes {stable_mosaic.version = 11 : i64} {
  func.func @_policy_kernel(%arg0: i32, %arg1: memref<8x32xf32, #tpu.memory_space<vmem>>, %arg2: memref<32x128xf32, #tpu.memory_space<vmem>>, %arg3: memref<1x128xf32, #tpu.memory_space<vmem>>, %arg4: memref<128x128xf32, #tpu.memory_space<vmem>>, %arg5: memref<1x128xf32, #tpu.memory_space<vmem>>, %arg6: memref<128x128xf32, #tpu.memory_space<vmem>>, %arg7: memref<1x128xf32, #tpu.memory_space<vmem>>, %arg8: memref<8x128xf32, #tpu.memory_space<vmem>>) attributes {dimension_semantics = [#tpu.dimension_semantics<parallel>], iteration_bounds = array<i64: 1>, scalar_prefetch = 0 : i64, scratch_operands = 0 : i64, tpu.core_type = #tpu.core_type<tc>, window_params = [{transform_indices = @transform_0, window_bounds = array<i64: 8, 32>}, {pipeline_mode = #tpu.pipeline_mode<synchronous>, transform_indices = @transform_1, window_bounds = array<i64: 32, 128>}, {pipeline_mode = #tpu.pipeline_mode<synchronous>, transform_indices = @transform_2, window_bounds = array<i64: 1, 128>}, {pipeline_mode = #tpu.pipeline_mode<synchronous>, transform_indices = @transform_3, window_bounds = array<i64: 128, 128>}, {pipeline_mode = #tpu.pipeline_mode<synchronous>, transform_indices = @transform_4, window_bounds = array<i64: 1, 128>}, {pipeline_mode = #tpu.pipeline_mode<synchronous>, transform_indices = @transform_5, window_bounds = array<i64: 128, 128>}, {pipeline_mode = #tpu.pipeline_mode<synchronous>, transform_indices = @transform_6, window_bounds = array<i64: 1, 128>}, {transform_indices = @transform_7, window_bounds = array<i64: 8, 128>}]} {
    %c0 = arith.constant 0 : index
    %c0_0 = arith.constant 0 : index
    %0 = vector.load %arg1[%c0, %c0_0] : memref<8x32xf32, #tpu.memory_space<vmem>>, vector<8x32xf32>
    %c0_1 = arith.constant 0 : index
    %c0_2 = arith.constant 0 : index
    %1 = vector.load %arg2[%c0_1, %c0_2] : memref<32x128xf32, #tpu.memory_space<vmem>>, vector<32x128xf32>
    %cst = arith.constant dense<0.000000e+00> : vector<8x128xf32>
    %2 = tpu.matmul %0, %1, %cst {dimension_numbers = #tpu.dot_dimension_numbers<[1], [0], [0], [1], [0, 0, 1, 1], [], []>} : vector<8x32xf32>, vector<32x128xf32>, vector<8x128xf32> -> vector<8x128xf32>
    %c0_3 = arith.constant 0 : index
    %c0_4 = arith.constant 0 : index
    %3 = vector.load %arg3[%c0_3, %c0_4] : memref<1x128xf32, #tpu.memory_space<vmem>>, vector<1x128xf32>
    %4 = vector.broadcast %3 : vector<1x128xf32> to vector<8x128xf32>
    %5 = arith.addf %2, %4 : vector<8x128xf32>
    %6 = math.tanh %5 : vector<8x128xf32>
    %c0_5 = arith.constant 0 : index
    %c0_6 = arith.constant 0 : index
    %7 = vector.load %arg4[%c0_5, %c0_6] : memref<128x128xf32, #tpu.memory_space<vmem>>, vector<128x128xf32>
    %cst_7 = arith.constant dense<0.000000e+00> : vector<8x128xf32>
    %8 = tpu.matmul %6, %7, %cst_7 {dimension_numbers = #tpu.dot_dimension_numbers<[1], [0], [0], [1], [0, 0, 1, 1], [], []>} : vector<8x128xf32>, vector<128x128xf32>, vector<8x128xf32> -> vector<8x128xf32>
    %c0_8 = arith.constant 0 : index
    %c0_9 = arith.constant 0 : index
    %9 = vector.load %arg5[%c0_8, %c0_9] : memref<1x128xf32, #tpu.memory_space<vmem>>, vector<1x128xf32>
    %10 = vector.broadcast %9 : vector<1x128xf32> to vector<8x128xf32>
    %11 = arith.addf %8, %10 : vector<8x128xf32>
    %12 = math.tanh %11 : vector<8x128xf32>
    %c0_10 = arith.constant 0 : index
    %c0_11 = arith.constant 0 : index
    %13 = vector.load %arg6[%c0_10, %c0_11] : memref<128x128xf32, #tpu.memory_space<vmem>>, vector<128x128xf32>
    %cst_12 = arith.constant dense<0.000000e+00> : vector<8x128xf32>
    %14 = tpu.matmul %12, %13, %cst_12 {dimension_numbers = #tpu.dot_dimension_numbers<[1], [0], [0], [1], [0, 0, 1, 1], [], []>} : vector<8x128xf32>, vector<128x128xf32>, vector<8x128xf32> -> vector<8x128xf32>
    %c0_13 = arith.constant 0 : index
    %c0_14 = arith.constant 0 : index
    %15 = vector.load %arg7[%c0_13, %c0_14] : memref<1x128xf32, #tpu.memory_space<vmem>>, vector<1x128xf32>
    %16 = vector.broadcast %15 : vector<1x128xf32> to vector<8x128xf32>
    %17 = arith.addf %14, %16 : vector<8x128xf32>
    %c0_15 = arith.constant 0 : index
    %c0_16 = arith.constant 0 : index
    %18 = vector.load %arg8[%c0_15, %c0_16] : memref<8x128xf32, #tpu.memory_space<vmem>>, vector<8x128xf32>
    tpu.vector_store %arg8[%c0_15, %c0_16], %17 {strides = array<i32>} : memref<8x128xf32, #tpu.memory_space<vmem>>, vector<8x128xf32>,
    return
  }
  func.func @transform_0(%arg0: i32) -> (i32, i32) {
    %c0_i32 = arith.constant 0 : i32
    %c0_i32_0 = arith.constant 0 : i32
    return %arg0, %c0_i32 : i32, i32
  }
  func.func @transform_1(%arg0: i32) -> (i32, i32) {
    %c0_i32 = arith.constant 0 : i32
    %c0_i32_0 = arith.constant 0 : i32
    %c0_i32_1 = arith.constant 0 : i32
    return %c0_i32, %c0_i32_0 : i32, i32
  }
  func.func @transform_2(%arg0: i32) -> (i32, i32) {
    %c0_i32 = arith.constant 0 : i32
    %c0_i32_0 = arith.constant 0 : i32
    %c0_i32_1 = arith.constant 0 : i32
    return %c0_i32, %c0_i32_0 : i32, i32
  }
  func.func @transform_3(%arg0: i32) -> (i32, i32) {
    %c0_i32 = arith.constant 0 : i32
    %c0_i32_0 = arith.constant 0 : i32
    %c0_i32_1 = arith.constant 0 : i32
    return %c0_i32, %c0_i32_0 : i32, i32
  }
  func.func @transform_4(%arg0: i32) -> (i32, i32) {
    %c0_i32 = arith.constant 0 : i32
    %c0_i32_0 = arith.constant 0 : i32
    %c0_i32_1 = arith.constant 0 : i32
    return %c0_i32, %c0_i32_0 : i32, i32
  }
  func.func @transform_5(%arg0: i32) -> (i32, i32) {
    %c0_i32 = arith.constant 0 : i32
    %c0_i32_0 = arith.constant 0 : i32
    %c0_i32_1 = arith.constant 0 : i32
    return %c0_i32, %c0_i32_0 : i32, i32
  }
  func.func @transform_6(%arg0: i32) -> (i32, i32) {
    %c0_i32 = arith.constant 0 : i32
    %c0_i32_0 = arith.constant 0 : i32
    %c0_i32_1 = arith.constant 0 : i32
    return %c0_i32, %c0_i32_0 : i32, i32
  }
  func.func @transform_7(%arg0: i32) -> (i32, i32) {
    %c0_i32 = arith.constant 0 : i32
    %c0_i32_0 = arith.constant 0 : i32
    return %arg0, %c0_i32 : i32, i32
  }
}

</mosaic_0001>

<bundles_post_ra>
// kernel: diag_gaussian_policy_forward.1
= control target key start
LH: loop header
LB: loop body
LE: loop exit
PB: predicated region body
PF: predicated region fallthrough
CT: control target
= control target key end

     0   :  { %12 = vsyncpa [#allocation3], 0  ;;  %s706_s0 = inlined_call_operand.hbm [shape: f32[8,32], index: 0, kind: input, shape index: {}]   ;;  %s707_s1 = inlined_call_operand.hbm [shape: f32[32,128], index: 1, kind: input, shape index: {}]   ;;  %s708_s2 = inlined_call_operand.vmem [shape: f32[1,128], index: 2, kind: input, shape index: {}]   ;;  %s709_s3 = inlined_call_operand.hbm [shape: f32[128,128], index: 3, kind: input, shape index: {}]   ;;  %s710_s4 = inlined_call_operand.vmem [shape: f32[1,128], index: 4, kind: input, shape index: {}]   ;;  %s711_s5 = inlined_call_operand.hbm [shape: f32[128,128], index: 5, kind: input, shape index: {}]   ;;  %s712_s6 = inlined_call_operand.vmem [shape: f32[1,128], index: 6, kind: input, shape index: {}]   ;;  %s713_s7 = inlined_call_operand.vmem [shape: f32[8,128], index: 7, kind: output, shape index: {}]  }
   0x1   :  { %13 = vsyncpa [#allocation5], 0 }
   0x2   :  { %14 = vsyncpa [#allocation8], 0  ;;  %s583_s24 = smov [#allocation4]  }
   0x3   :  { %s30_s25 = sshll.u32 %s583_s24, 4  ;;  %s31_s25 = int_to_ptr.vmem [resolvable:$true] %s30_s25 }
   0x4   :  { %s505_s26 = scalar_lea.vmem %s31_s25, 512  ;;  %p510_p1 = scmp.lt.s32.totalorder %s31_s25, %s31_s25 }
   0x5   :  { %p506_p0 = scmp.ne.s32.totalorder %s31_s25, %s505_s26  ;;  %p511_p2 = scmp.lt.s32.totalorder %s505_s26, %s505_s26 }
   0x7   :  { %p512_p3 = por %p511_p2, %p510_p1 }
   0x9   :  { %p513_p4 = pnand %p512_p3, %p506_p0 }
   0xb   :  { %516 = shalt.err (!%p513_p4)
}
   0xc   :  { %s584_s27 = smov 128   ;;  %s585_s28 = smov 8  }
   0xd   :  { %36 = dma.hbm_to_vmem [thread:$0]  %s707_s1, 512, %s31_s25, [#allocation5], %s584_s27, %s584_s27, %s585_s28  }
   0xe   :  { %s586_s8 = smov [#allocation2]   ;;  %s587_s10 = smov [#allocation6]  }
   0xf   :  { %s21_s9 = sshll.u32 %s586_s8, 4  ;;  %s44_s11 = sshll.u32 %s587_s10, 4  ;;  %s22_s9 = int_to_ptr.vmem [resolvable:$true] %s21_s9  ;;  %s45_s11 = int_to_ptr.vmem [resolvable:$true] %s44_s11 }
  0x10   :  { %s525_s12 = scalar_lea.vmem %s22_s9, 128  ;;  %p530_p6 = scmp.lt.s32.totalorder %s22_s9, %s22_s9 }
  0x11   :  { %p526_p5 = scmp.ne.s32.totalorder %s22_s9, %s525_s12  ;;  %p531_p7 = scmp.lt.s32.totalorder %s525_s12, %s525_s12 }
  0x13   :  { %p532_p8 = por %p531_p7, %p530_p6 }
  0x15   :  { %p533_p9 = pnand %p532_p8, %p526_p5 }
  0x17   :  { %536 = shalt.err (!%p533_p9)
}
  0x18   :  { %24 = dma.hbm_to_vmem [thread:$0]  %s706_s0, 128, %s22_s9, [#allocation3]  }
  0x19   :  { %s545_s15 = scalar_lea.vmem %s45_s11, 2048  ;;  %p550_p11 = scmp.lt.s32.totalorder %s45_s11, %s45_s11 }
  0x1a   :  { %p546_p10 = scmp.ne.s32.totalorder %s45_s11, %s545_s15  ;;  %p551_p12 = scmp.lt.s32.totalorder %s545_s15, %s545_s15 }
  0x1c   :  { %p552_p13 = por %p551_p12, %p550_p11 }
  0x1e   :  { %p553_p0 = pnand %p552_p13, %p546_p10 }
  0x20   :  { %556 = shalt.err (!%p553_p0)
}
  0x21   :  { %50 = dma.hbm_to_vmem [thread:$0]  %s709_s3, 2048, %s45_s11, [#allocation5], %s584_s27, %s584_s27, %s585_s28  }
  0x22   :  { %s588_s17 = smov [#allocation7]  }
  0x23   :  { %s58_s18 = sshll.u32 %s588_s17, 4  ;;  %s59_s18 = int_to_ptr.vmem [resolvable:$true] %s58_s18 }
  0x24   :  { %s565_s19 = scalar_lea.vmem %s59_s18, 2048  ;;  %p570_p2 = scmp.lt.s32.totalorder %s59_s18, %s59_s18 }
  0x25   :  { %p566_p1 = scmp.ne.s32.totalorder %s59_s18, %s565_s19  ;;  %p571_p3 = scmp.lt.s32.totalorder %s565_s19, %s565_s19 }
  0x27   :  { %p572_p4 = por %p571_p3, %p570_p2 }
  0x29   :  { %p573_p5 = pnand %p572_p4, %p566_p1 }
  0x2b   :  { %576 = shalt.err (!%p573_p5)
}
  0x2c   :  { %64 = dma.hbm_to_vmem [thread:$0]  %s711_s5, 2048, %s59_s18, [#allocation8], %s584_s27, %s584_s27, %s585_s28  }
  0x2d   :  { %577 = dma.done.wait [#allocation3], 128  }
  0x2e   :  { %578 = vsyncadd [#allocation3], 4294967168 }
  0x2f   :  { %579 = dma.done.wait [#allocation5], 2560  }
  0x30   :  { %580 = vsyncadd [#allocation5], 4294964736 }
  0x31   :  { %581 = dma.done.wait [#allocation8], 2048  }
  0x32   :  { %582 = vsyncadd [#allocation8], 4294965248  ;;  %v589_v0 = vmov 0.0   ;;  %vm590_vm0 = vmmov 0   ;;  %v83_v1 = vld [vmem:[#allocation4 + $0x18] sm:$0xff]  ;;  %v82_v2 = vld [vmem:[#allocation4 + $0x10] sm:$0xff] }
  0x33   :  { %404 = vmatprep.subr.mxu0 %v589_v0  ;;  %412 = vmatprep.mubr.msk.f32.mxu0 %vm590_vm0, %v589_v0  ;;  %v181_v3 = vld [vmem:[#allocation6 + $0x78] sm:$0xff]  ;;  %v81_v4 = vld [vmem:[#allocation4 + $0x8] sm:$0xff]  ;;  %v180_v5 = vld [vmem:[#allocation6 + $0x70] sm:$0xff]  ;;  %vm91_vm1 = vcmask 261120  }
  0x34   :  { %415 = vmatprep.subr.mxu1 %v589_v0  ;;  %447 = vmatprep.mubr.msk.f32.mxu1 %vm590_vm0, %v589_v0  ;;  %v179_v6 = vld [vmem:[#allocation6 + $0x68] sm:$0xff]  ;;  %v80_v7 = vld [vmem:[#allocation4] sm:$0xff]  ;;  %v79_v8 = vld [vmem:[#allocation2] sm:$0xff] }
  0x35   :  { %405 = vmatpush3.msra.mxu0 %v83_v1  ;;  %416 = vmatpush3.msra.mxu1 %v181_v3  ;;  %v178_v9 = vld [vmem:[#allocation6 + $0x60] sm:$0xff]  ;;  %v177_v10 = vld [vmem:[#allocation6 + $0x58] sm:$0xff]  ;;  %v176_v11 = vld [vmem:[#allocation6 + $0x50] sm:$0xff] }
  0x36   :  { %406 = vmatprep.subr.mxu0 %v589_v0  ;;  %417 = vmatprep.subr.mxu1 %v589_v0  ;;  %v175_v12 = vld [vmem:[#allocation6 + $0x48] sm:$0xff]  ;;  %v174_v13 = vld [vmem:[#allocation6 + $0x40] sm:$0xff]  ;;  %v173_v14 = vld [vmem:[#allocation6 + $0x38] sm:$0xff] }
  0x37   :  { %407 = vmatpush3.msra.mxu0 %v82_v2  ;;  %418 = vmatpush3.msra.mxu1 %v180_v5  ;;  %v172_v15 = vld [vmem:[#allocation6 + $0x30] sm:$0xff]  ;;  %v171_v16 = vld [vmem:[#allocation6 + $0x28] sm:$0xff]  ;;  %v170_v17 = vld [vmem:[#allocation6 + $0x20] sm:$0xff] }
  0x38   :  { %408 = vmatprep.subr.mxu0 %v589_v0  ;;  %419 = vmatprep.subr.mxu1 %v589_v0  ;;  %v169_v18 = vld [vmem:[#allocation6 + $0x18] sm:$0xff]  ;;  %v168_v19 = vld [vmem:[#allocation6 + $0x10] sm:$0xff]  ;;  %v167_v20 = vld [vmem:[#allocation6 + $0x8] sm:$0xff] }
  0x39   :  { %409 = vmatpush3.msra.mxu0 %v81_v4  ;;  %420 = vmatpush3.msra.mxu1 %v179_v6  ;;  %v166_v21 = vld [vmem:[#allocation6] sm:$0xff]  ;;  %v275_v22 = vld [vmem:[#allocation7 + $0x78] sm:$0xff]  ;;  %v274_v23 = vld [vmem:[#allocation7 + $0x70] sm:$0xff] }
  0x3a   :  { %410 = vmatprep.subr.mxu0 %v589_v0  ;;  %421 = vmatprep.subr.mxu1 %v589_v0  ;;  %v273_v24 = vld [vmem:[#allocation7 + $0x68] sm:$0xff]  ;;  %v272_v25 = vld [vmem:[#allocation7 + $0x60] sm:$0xff]  ;;  %v271_v26 = vld [vmem:[#allocation7 + $0x58] sm:$0xff] }
  0x3b   :  { %411 = vmatpush3.msra.mxu0 %v80_v7  ;;  %422 = vmatpush3.msra.mxu1 %v178_v9  ;;  %v270_v27 = vld [vmem:[#allocation7 + $0x50] sm:$0xff]  ;;  %v269_v28 = vld [vmem:[#allocation7 + $0x48] sm:$0xff]  ;;  %v361_v29 = vld [vmem:[%s708_s2] ss:$0 sm:$0xff] }
  0x3c   :  { %413 = vmatmul.mubr.msk.f32.vlgmr.msra.gmra.mxu0 %vm91_vm1, %v79_v8  ;;  %423 = vmatprep.subr.mxu1 %v589_v0  ;;  %v268_v34 = vld [vmem:[#allocation7 + $0x40] sm:$0xff]  ;;  %v267_v35 = vld [vmem:[#allocation7 + $0x38] sm:$0xff]  ;;  %v266_v36 = vld [vmem:[#allocation7 + $0x30] sm:$0xff] }
  0x3d   :  { %450 = vmatprep.subr.mxu0 %v589_v0  ;;  %424 = vmatpush3.msra.mxu1 %v177_v10  ;;  %v265_v37 = vld [vmem:[#allocation7 + $0x28] sm:$0xff]  ;;  %v264_v38 = vld [vmem:[#allocation7 + $0x20] sm:$0xff]  ;;  %v263_v39 = vld [vmem:[#allocation7 + $0x18] sm:$0xff] }
  0x3e   :  { %482 = vmatprep.mubr.msk.f32.mxu0 %vm590_vm0, %v589_v0  ;;  %425 = vmatprep.subr.mxu1 %v589_v0  ;;  %v262_v40 = vld [vmem:[#allocation7 + $0x10] sm:$0xff]  ;;  %v261_v41 = vld [vmem:[#allocation7 + $0x8] sm:$0xff]  ;;  %v260_v42 = vld [vmem:[#allocation7] sm:$0xff] }
  0x3f   :  { %426 = vmatpush3.msra.mxu1 %v176_v11  ;;  %451 = vmatpush3.msra.mxu0 %v275_v22  ;;  %v363_v43 = vld [vmem:[%s710_s4] ss:$0 sm:$0xff] }
  0x40   :  { %427 = vmatprep.subr.mxu1 %v589_v0  ;;  %452 = vmatprep.subr.mxu0 %v589_v0  ;;  %v364_v48 = vld [vmem:[%s712_s6] ss:$0 sm:$0xff] }
  0x41   :  { %428 = vmatpush3.msra.mxu1 %v175_v12  ;;  %453 = vmatpush3.msra.mxu0 %v274_v23 }
  0x42   :  { %429 = vmatprep.subr.mxu1 %v589_v0  ;;  %454 = vmatprep.subr.mxu0 %v589_v0 }
  0x43   :  { %430 = vmatpush3.msra.mxu1 %v174_v13  ;;  %455 = vmatpush3.msra.mxu0 %v273_v24 }
  0x44   :  { %431 = vmatprep.subr.mxu1 %v589_v0  ;;  %456 = vmatprep.subr.mxu0 %v589_v0 }
  0x45   :  { %432 = vmatpush3.msra.mxu1 %v173_v14  ;;  %457 = vmatpush3.msra.mxu0 %v272_v25 }
  0x46   :  { %433 = vmatprep.subr.mxu1 %v589_v0  ;;  %458 = vmatprep.subr.mxu0 %v589_v0 }
  0x47   :  { %434 = vmatpush3.msra.mxu1 %v172_v15  ;;  %459 = vmatpush3.msra.mxu0 %v271_v26 }
  0x48   :  { %435 = vmatprep.subr.mxu1 %v589_v0  ;;  %460 = vmatprep.subr.mxu0 %v589_v0 }
  0x49   :  { %436 = vmatpush3.msra.mxu1 %v171_v16  ;;  %461 = vmatpush3.msra.mxu0 %v270_v27 }
  0x4a   :  { %437 = vmatprep.subr.mxu1 %v589_v0  ;;  %462 = vmatprep.subr.mxu0 %v589_v0 }
  0x4b   :  { %438 = vmatpush3.msra.mxu1 %v170_v17  ;;  %463 = vmatpush3.msra.mxu0 %v269_v28 }
  0x4c   :  { %439 = vmatprep.subr.mxu1 %v589_v0  ;;  %464 = vmatprep.subr.mxu0 %v589_v0 }
  0x4d   :  { %440 = vmatpush3.msra.mxu1 %v169_v18  ;;  %465 = vmatpush3.msra.mxu0 %v268_v34 }
  0x4e   :  { %441 = vmatprep.subr.mxu1 %v589_v0  ;;  %466 = vmatprep.subr.mxu0 %v589_v0 }
  0x4f   :  { %442 = vmatpush3.msra.mxu1 %v168_v19  ;;  %467 = vmatpush3.msra.mxu0 %v267_v35 }
  0x50   :  { %443 = vmatprep.subr.mxu1 %v589_v0  ;;  %468 = vmatprep.subr.mxu0 %v589_v0 }
  0x51   :  { %444 = vmatpush3.msra.mxu1 %v167_v20  ;;  %469 = vmatpush3.msra.mxu0 %v266_v36 }
  0x52   :  { %445 = vmatprep.subr.mxu1 %v589_v0  ;;  %470 = vmatprep.subr.mxu0 %v589_v0 }
  0x53   :  { %446 = vmatpush3.msra.mxu1 %v166_v21  ;;  %471 = vmatpush3.msra.mxu0 %v265_v37 }
  0x54   :  { %472 = vmatprep.subr.mxu0 %v589_v0 }
  0x55   :  { %473 = vmatpush3.msra.mxu0 %v264_v38 }
  0x56   :  { %474 = vmatprep.subr.mxu0 %v589_v0 }
  0x57   :  { %475 = vmatpush3.msra.mxu0 %v263_v39 }
  0x58   :  { %476 = vmatprep.subr.mxu0 %v589_v0 }
  0x59   :  { %477 = vmatpush3.msra.mxu0 %v262_v40 }
  0x5a   :  { %478 = vmatprep.subr.mxu0 %v589_v0 }
  0x5b   :  { %479 = vmatpush3.msra.mxu0 %v261_v41 }
  0x5c   :  { %480 = vmatprep.subr.mxu0 %v589_v0 }
  0x5d   :  { %481 = vmatpush3.msra.mxu0 %v260_v42 }
  0xfc   :  { %v161_v30 = vpop.f32.mrf.mxu0 }
  0xfd   :  { %v162_v31 = vadd.f32 %v361_v29, %v161_v30 }
  0xfe   :  { %v414_v32 = vpop.f32.mrf.mxu0 }
  0xff   :  { %493 = vtanh.f32 %v162_v31 }
 0x10c   :  { %v494_v33 = vpop.eup %493 }
 0x10d   :  { %448 = vmatmul.mubr.f32.vlgmr.msra.gmra.mxu1 %v494_v33 }
 0x1cd   :  { %v255_v44 = vpop.f32.mrf.mxu1 }
 0x1ce   :  { %v256_v45 = vadd.f32 %v363_v43, %v255_v44 }
 0x1cf   :  { %v449_v46 = vpop.f32.mrf.mxu1 }
 0x1d0   :  { %495 = vtanh.f32 %v256_v45 }
 0x1dd   :  { %v496_v47 = vpop.eup %495 }
 0x1de   :  { %483 = vmatmul.mubr.f32.vlgmr.msra.gmra.mxu0 %v496_v47 }
 0x29e   :  { %v349_v49 = vpop.f32.mrf.mxu0 }
 0x29f   :  { %v350_v50 = vadd.f32 %v364_v48, %v349_v49 }
 0x2a0   :  { %v484_v51 = vpop.f32.mrf.mxu0 }
 0x2a1   :  { %353 = vst [vmem:[%s713_s7] sm:$0xff] %v350_v50 }
 0x2a2   :  { %358 = vsyncpa [#allocation3], 1 }
 0x2a3   :  { %359 = vsyncpa [#allocation5], 1 }
 0x2a4   :  { %360 = vsyncpa [#allocation8], 1 }

</bundles_post_ra>
